<compile_context>
chip_gen: v6e
topology: v6e:2x2x1
jax: 0.10.0
libtpu: 0.0.40
codegen_flags: <defaults>
</compile_context>

<pallas_src>
import numpy as np
import jax
import jax.numpy as jnp
from jax.experimental import pallas as pl
from jax.experimental.pallas import tpu as pltpu


def _block_revert_kernel(tb_ref, eidx_ref, mask_ref, pe_ref, emb_ref, out_ref):
    """One (seq-tile, batch) grid step.

    tb_ref  : [1, tS, Mtot, D]  temporal block (global token at modality 0)
    eidx_ref: [1, tS, Mout, 1]  unified int32 gather index into tb's modality
                                axis; values >= Mtot mean "mask token"
    mask_ref: [1, 1, D]         mask token
    pe_ref  : [tS, 1, D]        sinusoidal positional encoding (this seq tile)
    emb_ref : [1, Mout, D]      modality embedding table
    out_ref : [1, tS, Mout, D]
    """
    m_tot = tb_ref.shape[2]
    f32 = jnp.float32

    eidx = eidx_ref[0]                                   # [tS, Mout, 1] int32

    # Accumulator starts at the positional + modality-embedding bias
    # ([tS,1,D] + [1,Mout,D] -> [tS,Mout,D]); saves a zeros materialization
    # and one add per element vs. adding the bias at the end.
    acc = pe_ref[...].astype(f32) + emb_ref[...].astype(f32)

    # Gather-by-select over the (small) source-modality axis, vectorized over
    # all output modalities.  One-hot multipliers are exactly 0/1, so this is
    # bit-identical to take_along_axis for in-range indices.
    for m in range(m_tot):
        sel = (eidx == m).astype(f32)                    # [tS, Mout, 1]
        acc = acc + sel * tb_ref[0, :, m:m + 1, :].astype(f32)   # [tS, 1, D]
    acc = acc + (eidx >= m_tot).astype(f32) * mask_ref[...].astype(f32)

    # TODO(synk): PositionalEncoding dropout is treated as identity (eval mode).
    # Single dense store of the whole [tS, Mout, D] tile.
    out_ref[0] = acc.astype(out_ref.dtype)


def _pick_seq_tile(S, D, itemsize, vmem_budget_bytes=24 * 1024 * 1024):
    """Largest seq tile that divides S, is a multiple of 8, and keeps the
    double-buffered working set (with sublane/lane padding) under budget."""
    d_pad = ((D + 127) // 128) * 128
    # Per sequence row, per buffer: tb block + out block + pe block (all pad
    # the second-to-last dim to 8 sublanes) + the int32 gather-index block.
    row_bytes = 3 * 8 * d_pad * itemsize + 8 * 128 * 4
    candidates = [t for t in (1024, 512, 256, 128, 64, 32, 16, 8)
                  if t <= S and S % t == 0]
    if not candidates:
        return S
    for t in candidates:
        if 2 * t * row_bytes <= vmem_budget_bytes:
            return t
    return candidates[-1]


def block_revert(temporal_block, revert_idx, mask_token, pe, mod_emb_weight):
    B, S, Mtot, D = temporal_block.shape
    Nrev = revert_idx.shape[-1]
    Mout = 1 + Nrev
    dtype = temporal_block.dtype
    itemsize = jnp.dtype(dtype).itemsize

    # Unified gather index over the *output* modality axis:
    #   o == 0  -> source modality 0 (global token, no gather)
    #   o >= 1  -> source modality 1 + revert_idx[..., o-1]
    #   >= Mtot -> mask token
    eidx = jnp.concatenate(
        [jnp.zeros((B, S, 1), jnp.int32), revert_idx.astype(jnp.int32) + 1],
        axis=-1)[..., None]                               # [B, S, Mout, 1]

    # Free metadata reshapes so every broadcast operand arrives pre-shaped.
    pe3 = pe.reshape(S, 1, D)
    emb3 = mod_emb_weight.reshape(1, Mout, D)
    mask3 = mask_token.reshape(1, 1, D)

    tS = _pick_seq_tile(S, D, itemsize)
    grid = (S // tS, B)   # batch innermost -> pe/emb/mask blocks not re-fetched per b

    cost = pl.CostEstimate(
        flops=int(3 * B * S * Mout * D * (Mtot + 2)),
        transcendentals=0,
        bytes_accessed=int(
            itemsize * (B * S * Mtot * D + B * S * Mout * D + S * D + Mout * D + D)
            + 4 * B * S * Mout),
    )

    return pl.pallas_call(
        _block_revert_kernel,
        out_shape=jax.ShapeDtypeStruct((B, S, Mout, D), dtype),
        grid=grid,
        in_specs=[
            pl.BlockSpec((1, tS, Mtot, D), lambda s, b: (b, s, 0, 0)),
            pl.BlockSpec((1, tS, Mout, 1), lambda s, b: (b, s, 0, 0)),
            pl.BlockSpec((1, 1, D), lambda s, b: (0, 0, 0)),
            pl.BlockSpec((tS, 1, D), lambda s, b: (s, 0, 0)),
            pl.BlockSpec((1, Mout, D), lambda s, b: (0, 0, 0)),
        ],
        out_specs=pl.BlockSpec((1, tS, Mout, D), lambda s, b: (b, s, 0, 0)),
        compiler_params=pltpu.CompilerParams(
            dimension_semantics=("parallel", "parallel"),
            vmem_limit_bytes=32 * 1024 * 1024,
        ),
        cost_estimate=cost,
    )(temporal_block, eidx, mask3, pe3, emb3)


def sinusoidal_pe(seq_len, d_model, dtype=jnp.float32):
    position = np.arange(seq_len, dtype=np.float32)[:, None]
    div_term = np.exp(
        np.arange(0, d_model, 2, dtype=np.float32) * (-np.log(10000.0) / d_model)
    )
    pe = np.zeros((seq_len, d_model), dtype=np.float32)
    pe[:, 0::2] = np.sin(position * div_term)
    pe[:, 1::2] = np.cos(position * div_term)
    return jnp.asarray(pe, dtype=dtype)


def ref_block_revert(tb, revert_idx, mask_token, pe, emb):
    """Pure-JAX reference mirroring the PyTorch forward (dropout = identity)."""
    B, S, Mtot, D = tb.shape
    Nrev = revert_idx.shape[-1]
    global_block = tb[:, :, :1, :]
    valid = tb[:, :, 1:, :]
    mask_b = jnp.broadcast_to(mask_token[None, None, None, :], (B, S, Nrev, D))
    src = jnp.concatenate([valid, mask_b], axis=2)
    idx_full = jnp.broadcast_to(revert_idx[..., None], (B, S, Nrev, D))
    gathered = jnp.take_along_axis(src, idx_full, axis=2)
    trb = jnp.concatenate([global_block, gathered], axis=2)
    return trb + pe[None, :, None, :] + emb[None, None, :, :]


if __name__ == "__main__":
    B, S, D = 2, 8, 32
    M_valid, N_rev = 4, 6
    M_tot = 1 + M_valid          # global token + valid modalities
    M_out = 1 + N_rev            # global token + reverted modalities

    key = jax.random.PRNGKey(0)
    k1, k2, k3, k4 = jax.random.split(key, 4)
    temporal_block = jax.random.normal(k1, (B, S, M_tot, D), dtype=jnp.float32)
    # gather indices into concat([valid (M_valid rows), mask copies (N_rev rows)])
    revert_idx = jax.random.randint(
        k2, (B, S, N_rev), 0, M_valid + N_rev, dtype=jnp.int32
    )
    # deterministic "parameters" (synthetic init, no checkpoint load)
    mask_token = 0.02 * jax.random.normal(k3, (D,), dtype=jnp.float32)
    mod_emb_weight = 0.02 * jax.random.normal(k4, (M_out, D), dtype=jnp.float32)
    pe = sinusoidal_pe(S, D)

    out = block_revert(temporal_block, revert_idx, mask_token, pe, mod_emb_weight)
    out = jax.block_until_ready(out)

    ref = ref_block_revert(temporal_block, revert_idx, mask_token, pe, mod_emb_weight)
    np.testing.assert_allclose(np.asarray(out), np.asarray(ref), rtol=1e-5, atol=1e-5)
    print("KERNEL_OK")
</pallas_src>

<mosaic_0001>
module attributes {stable_mosaic.version = 11 : i64} {
  func.func @_block_revert_kernel(%arg0: i32, %arg1: i32, %arg2: memref<1x8x5x32xf32, #tpu.memory_space<vmem>>, %arg3: memref<1x8x7x1xi32, #tpu.memory_space<vmem>>, %arg4: memref<1x1x32xf32, #tpu.memory_space<vmem>>, %arg5: memref<8x1x32xf32, #tpu.memory_space<vmem>>, %arg6: memref<1x7x32xf32, #tpu.memory_space<vmem>>, %arg7: memref<1x8x7x32xf32, #tpu.memory_space<vmem>>) attributes {dimension_semantics = [#tpu.dimension_semantics<parallel>, #tpu.dimension_semantics<parallel>], iteration_bounds = array<i64: 1, 2>, scalar_prefetch = 0 : i64, scratch_operands = 0 : i64, tpu.core_type = #tpu.core_type<tc>, window_params = [{transform_indices = @transform_0, window_bounds = array<i64: 1, 8, 5, 32>}, {transform_indices = @transform_1, window_bounds = array<i64: 1, 8, 7, 1>}, {pipeline_mode = #tpu.pipeline_mode<synchronous>, transform_indices = @transform_2, window_bounds = array<i64: 1, 1, 32>}, {transform_indices = @transform_3, window_bounds = array<i64: 8, 1, 32>}, {pipeline_mode = #tpu.pipeline_mode<synchronous>, transform_indices = @transform_4, window_bounds = array<i64: 1, 7, 32>}, {transform_indices = @transform_5, window_bounds = array<i64: 1, 8, 7, 32>}]} {
    %c0 = arith.constant 0 : index
    %c0_0 = arith.constant 0 : index
    %c0_1 = arith.constant 0 : index
    %c0_2 = arith.constant 0 : index
    %0 = vector.load %arg3[%c0, %c0_0, %c0_1, %c0_2] : memref<1x8x7x1xi32, #tpu.memory_space<vmem>>, vector<1x8x7x1xi32>
    %1 = vector.shape_cast %0 : vector<1x8x7x1xi32> to vector<8x7x1xi32>
    %c0_3 = arith.constant 0 : index
    %c0_4 = arith.constant 0 : index
    %c0_5 = arith.constant 0 : index
    %2 = vector.load %arg5[%c0_3, %c0_4, %c0_5] : memref<8x1x32xf32, #tpu.memory_space<vmem>>, vector<8x1x32xf32>
    %c0_6 = arith.constant 0 : index
    %c0_7 = arith.constant 0 : index
    %c0_8 = arith.constant 0 : index
    %3 = vector.load %arg6[%c0_6, %c0_7, %c0_8] : memref<1x7x32xf32, #tpu.memory_space<vmem>>, vector<1x7x32xf32>
    %4 = vector.broadcast %2 : vector<8x1x32xf32> to vector<8x7x32xf32>
    %5 = vector.broadcast %3 : vector<1x7x32xf32> to vector<8x7x32xf32>
    %6 = arith.addf %4, %5 : vector<8x7x32xf32>
    %c0_i32 = arith.constant 0 : i32
    %7 = vector.broadcast %c0_i32 : i32 to vector<8x7x1xi32>
    %8 = arith.cmpi eq, %1, %7 : vector<8x7x1xi32>
    %9 = arith.extui %8 : vector<8x7x1xi1> to vector<8x7x1xi32>
    %10 = arith.sitofp %9 : vector<8x7x1xi32> to vector<8x7x1xf32>
    %c0_9 = arith.constant 0 : index
    %c0_10 = arith.constant 0 : index
    %c0_11 = arith.constant 0 : index
    %c0_12 = arith.constant 0 : index
    %11 = vector.load %arg2[%c0_9, %c0_10, %c0_11, %c0_12] : memref<1x8x5x32xf32, #tpu.memory_space<vmem>>, vector<1x8x1x32xf32>
    %12 = vector.shape_cast %11 : vector<1x8x1x32xf32> to vector<8x1x32xf32>
    %13 = vector.broadcast %10 : vector<8x7x1xf32> to vector<8x7x32xf32>
    %14 = vector.broadcast %12 : vector<8x1x32xf32> to vector<8x7x32xf32>
    %15 = arith.mulf %13, %14 : vector<8x7x32xf32>
    %16 = arith.addf %6, %15 : vector<8x7x32xf32>
    %c1_i32 = arith.constant 1 : i32
    %17 = vector.broadcast %c1_i32 : i32 to vector<8x7x1xi32>
    %18 = arith.cmpi eq, %1, %17 : vector<8x7x1xi32>
    %19 = arith.extui %18 : vector<8x7x1xi1> to vector<8x7x1xi32>
    %20 = arith.sitofp %19 : vector<8x7x1xi32> to vector<8x7x1xf32>
    %c0_13 = arith.constant 0 : index
    %c0_14 = arith.constant 0 : index
    %c1 = arith.constant 1 : index
    %c0_15 = arith.constant 0 : index
    %21 = vector.load %arg2[%c0_13, %c0_14, %c1, %c0_15] : memref<1x8x5x32xf32, #tpu.memory_space<vmem>>, vector<1x8x1x32xf32>
    %22 = vector.shape_cast %21 : vector<1x8x1x32xf32> to vector<8x1x32xf32>
    %23 = vector.broadcast %20 : vector<8x7x1xf32> to vector<8x7x32xf32>
    %24 = vector.broadcast %22 : vector<8x1x32xf32> to vector<8x7x32xf32>
    %25 = arith.mulf %23, %24 : vector<8x7x32xf32>
    %26 = arith.addf %16, %25 : vector<8x7x32xf32>
    %c2_i32 = arith.constant 2 : i32
    %27 = vector.broadcast %c2_i32 : i32 to vector<8x7x1xi32>
    %28 = arith.cmpi eq, %1, %27 : vector<8x7x1xi32>
    %29 = arith.extui %28 : vector<8x7x1xi1> to vector<8x7x1xi32>
    %30 = arith.sitofp %29 : vector<8x7x1xi32> to vector<8x7x1xf32>
    %c0_16 = arith.constant 0 : index
    %c0_17 = arith.constant 0 : index
    %c2 = arith.constant 2 : index
    %c0_18 = arith.constant 0 : index
    %31 = vector.load %arg2[%c0_16, %c0_17, %c2, %c0_18] : memref<1x8x5x32xf32, #tpu.memory_space<vmem>>, vector<1x8x1x32xf32>
    %32 = vector.shape_cast %31 : vector<1x8x1x32xf32> to vector<8x1x32xf32>
    %33 = vector.broadcast %30 : vector<8x7x1xf32> to vector<8x7x32xf32>
    %34 = vector.broadcast %32 : vector<8x1x32xf32> to vector<8x7x32xf32>
    %35 = arith.mulf %33, %34 : vector<8x7x32xf32>
    %36 = arith.addf %26, %35 : vector<8x7x32xf32>
    %c3_i32 = arith.constant 3 : i32
    %37 = vector.broadcast %c3_i32 : i32 to vector<8x7x1xi32>
    %38 = arith.cmpi eq, %1, %37 : vector<8x7x1xi32>
    %39 = arith.extui %38 : vector<8x7x1xi1> to vector<8x7x1xi32>
    %40 = arith.sitofp %39 : vector<8x7x1xi32> to vector<8x7x1xf32>
    %c0_19 = arith.constant 0 : index
    %c0_20 = arith.constant 0 : index
    %c3 = arith.constant 3 : index
    %c0_21 = arith.constant 0 : index
    %41 = vector.load %arg2[%c0_19, %c0_20, %c3, %c0_21] : memref<1x8x5x32xf32, #tpu.memory_space<vmem>>, vector<1x8x1x32xf32>
    %42 = vector.shape_cast %41 : vector<1x8x1x32xf32> to vector<8x1x32xf32>
    %43 = vector.broadcast %40 : vector<8x7x1xf32> to vector<8x7x32xf32>
    %44 = vector.broadcast %42 : vector<8x1x32xf32> to vector<8x7x32xf32>
    %45 = arith.mulf %43, %44 : vector<8x7x32xf32>
    %46 = arith.addf %36, %45 : vector<8x7x32xf32>
    %c4_i32 = arith.constant 4 : i32
    %47 = vector.broadcast %c4_i32 : i32 to vector<8x7x1xi32>
    %48 = arith.cmpi eq, %1, %47 : vector<8x7x1xi32>
    %49 = arith.extui %48 : vector<8x7x1xi1> to vector<8x7x1xi32>
    %50 = arith.sitofp %49 : vector<8x7x1xi32> to vector<8x7x1xf32>
    %c0_22 = arith.constant 0 : index
    %c0_23 = arith.constant 0 : index
    %c4 = arith.constant 4 : index
    %c0_24 = arith.constant 0 : index
    %51 = vector.load %arg2[%c0_22, %c0_23, %c4, %c0_24] : memref<1x8x5x32xf32, #tpu.memory_space<vmem>>, vector<1x8x1x32xf32>
    %52 = vector.shape_cast %51 : vector<1x8x1x32xf32> to vector<8x1x32xf32>
    %53 = vector.broadcast %50 : vector<8x7x1xf32> to vector<8x7x32xf32>
    %54 = vector.broadcast %52 : vector<8x1x32xf32> to vector<8x7x32xf32>
    %55 = arith.mulf %53, %54 : vector<8x7x32xf32>
    %56 = arith.addf %46, %55 : vector<8x7x32xf32>
    %c5_i32 = arith.constant 5 : i32
    %57 = vector.broadcast %c5_i32 : i32 to vector<8x7x1xi32>
    %58 = arith.cmpi sge, %1, %57 : vector<8x7x1xi32>
    %59 = arith.extui %58 : vector<8x7x1xi1> to vector<8x7x1xi32>
    %60 = arith.sitofp %59 : vector<8x7x1xi32> to vector<8x7x1xf32>
    %c0_25 = arith.constant 0 : index
    %c0_26 = arith.constant 0 : index
    %c0_27 = arith.constant 0 : index
    %61 = vector.load %arg4[%c0_25, %c0_26, %c0_27] : memref<1x1x32xf32, #tpu.memory_space<vmem>>, vector<1x1x32xf32>
    %62 = vector.broadcast %60 : vector<8x7x1xf32> to vector<8x7x32xf32>
    %63 = vector.broadcast %61 : vector<1x1x32xf32> to vector<8x7x32xf32>
    %64 = arith.mulf %62, %63 : vector<8x7x32xf32>
    %65 = arith.addf %56, %64 : vector<8x7x32xf32>
    %c0_28 = arith.constant 0 : index
    %c0_29 = arith.constant 0 : index
    %c0_30 = arith.constant 0 : index
    %c0_31 = arith.constant 0 : index
    %66 = vector.load %arg7[%c0_28, %c0_29, %c0_30, %c0_31] : memref<1x8x7x32xf32, #tpu.memory_space<vmem>>, vector<1x8x7x32xf32>
    %67 = vector.shape_cast %66 : vector<1x8x7x32xf32> to vector<8x7x32xf32>
    %68 = vector.shape_cast %65 : vector<8x7x32xf32> to vector<1x8x7x32xf32>
    tpu.vector_store %arg7[%c0_28, %c0_29, %c0_30, %c0_31], %68 {strides = array<i32>} : memref<1x8x7x32xf32, #tpu.memory_space<vmem>>, vector<1x8x7x32xf32>,
    return
  }
  func.func @transform_0(%arg0: i32, %arg1: i32) -> (i32, i32, i32, i32) {
    %c0_i32 = arith.constant 0 : i32
    %c0_i32_0 = arith.constant 0 : i32
    %c0_i32_1 = arith.constant 0 : i32
    return %arg1, %arg0, %c0_i32, %c0_i32_0 : i32, i32, i32, i32
  }
  func.func @transform_1(%arg0: i32, %arg1: i32) -> (i32, i32, i32, i32) {
    %c0_i32 = arith.constant 0 : i32
    %c0_i32_0 = arith.constant 0 : i32
    %c0_i32_1 = arith.constant 0 : i32
    return %arg1, %arg0, %c0_i32, %c0_i32_0 : i32, i32, i32, i32
  }
  func.func @transform_2(%arg0: i32, %arg1: i32) -> (i32, i32, i32) {
    %c0_i32 = arith.constant 0 : i32
    %c0_i32_0 = arith.constant 0 : i32
    %c0_i32_1 = arith.constant 0 : i32
    %c0_i32_2 = arith.constant 0 : i32
    return %c0_i32, %c0_i32_0, %c0_i32_1 : i32, i32, i32
  }
  func.func @transform_3(%arg0: i32, %arg1: i32) -> (i32, i32, i32) {
    %c0_i32 = arith.constant 0 : i32
    %c0_i32_0 = arith.constant 0 : i32
    %c0_i32_1 = arith.constant 0 : i32
    return %arg0, %c0_i32, %c0_i32_0 : i32, i32, i32
  }
  func.func @transform_4(%arg0: i32, %arg1: i32) -> (i32, i32, i32) {
    %c0_i32 = arith.constant 0 : i32
    %c0_i32_0 = arith.constant 0 : i32
    %c0_i32_1 = arith.constant 0 : i32
    %c0_i32_2 = arith.constant 0 : i32
    return %c0_i32, %c0_i32_0, %c0_i32_1 : i32, i32, i32
  }
  func.func @transform_5(%arg0: i32, %arg1: i32) -> (i32, i32, i32, i32) {
    %c0_i32 = arith.constant 0 : i32
    %c0_i32_0 = arith.constant 0 : i32
    %c0_i32_1 = arith.constant 0 : i32
    return %arg1, %arg0, %c0_i32, %c0_i32_0 : i32, i32, i32, i32
  }
}

</mosaic_0001>

<bundles_post_ra>
// kernel: tpu_custom_call.1
= control target key start
LH: loop header
LB: loop body
LE: loop exit
PB: predicated region body
PF: predicated region fallthrough
CT: control target
= control target key end

     0   :  { %s1523_s18 = smov 0   ;;  %s1525_s19 = smov 0   ;;  %s1794_s0 = inlined_call_operand.vmem [shape: f32[2,8,5,32], index: 0, kind: input, shape index: {}]   ;;  %s1795_s1 = inlined_call_operand.vmem [shape: s32[2,8,7,1], index: 1, kind: input, shape index: {}]   ;;  %s1796_s2 = inlined_call_operand.vmem [shape: f32[1,1,32], index: 2, kind: input, shape index: {}]   ;;  %s1797_s3 = inlined_call_operand.vmem [shape: f32[8,1,32], index: 3, kind: input, shape index: {}]   ;;  %s1798_s4 = inlined_call_operand.vmem [shape: f32[1,7,32], index: 4, kind: input, shape index: {}]   ;;  %s1799_s5 = inlined_call_operand.vmem [shape: f32[2,8,7,32], index: 5, kind: output, shape index: {}]  }
   0x1   :  { %s1527_s20 = smov 0  }
   0x2 LB: > { %s24_s21 = sadd.s32 1, %s1485_s19  ;;  %p1210_p0 = scmp.ge.s32.totalorder %s1489_s20, 1  ;;  %s1489_s20 = sphi %s1527_s20, %s15_s20   ;;  %s1485_s19 = sphi %s1525_s19, %s1801_s19   ;;  %s1481_s18 = sphi %s1523_s18, %s1800_s18  }
   0x3   : > { %p25_p1 = scmp.ge.s32.totalorder %s24_s21, 2  ;;  %p235_p2 = scmp.lt.s32.totalorder %s1489_s20, 3 }
   0x5   : > { %s1803_s21 = smov (%p25_p1, %s24_s21), 0  ;;  %p236_p3 = pnand %p1210_p0, %p235_p2 }
   0x6   : > { %p285_p4 = scmp.lt.s32.totalorder (!%p236_p3), %s1481_s18, 1 }
   0x7   : > { %239 = sbr.rel (%p236_p3) target bundleno = 197 (0xc5), region = 40 }
   0xc   : > { %v1491_v0 = vmov 0   ;;  %s1805_s18 = smov (!%p285_p4, %s1481_s18), 1  ;;  %v1492_v5 = vmov 0.0  }
   0xd   : > { %1356 = vset.pattern.permute.xlu1 %v1491_v0  ;;  %1345 = vset.pattern.permute.xlu0 %v1491_v0  ;;  %s1541_s22 = sshll.u32 %s1805_s18, 6 }
   0xe   : > { %s302_s25 = scalar_lea.vmem %s1795_s1, %s1541_s22  ;;  %s1667_s28 = scalar_lea.vmem %s1794_s0, %s1541_s22 }
   0xf   : > { %v1547_v1 = vld [vmem:[%s302_s25 + $0x20] sm:$0x7f]  ;;  %v1549_v2 = vld [vmem:[%s302_s25 + $0x28] sm:$0x7f]  ;;  %v1563_v9 = vld [vmem:[%s302_s25 + $0x30] sm:$0x7f]  ;;  %s1767_s6 = scalar_lea.vmem %s1799_s5, %s1541_s22 }
  0x10   : > { %v1551_v3 = vld [vmem:[%s302_s25] sm:$0x7f]  ;;  %vm396_vm0 = vcmp.eq.s32.totalorder %v1547_v1, 0  ;;  %vm397_vm1 = vcmp.eq.s32.totalorder %v1549_v2, 0  ;;  %v1555_v4 = vld [vmem:[%s302_s25 + $0x8] sm:$0x7f] }
  0x11   : > { %vm392_vm2 = vcmp.eq.s32.totalorder %v1551_v3, 0  ;;  %vm512_vm3 = vcmp.eq.s32.totalorder %v1551_v3, 1  ;;  %v1229_v6 = vsel %vm396_vm0, 1.0, %v1492_v5  ;;  %v1230_v7 = vsel %vm397_vm1, 1.0, %v1492_v5  ;;  %v1566_v12 = vld [vmem:[%s302_s25 + $0x38] sm:$0x7f] }
  0x12   : > { %vm393_vm4 = vcmp.eq.s32.totalorder %v1555_v4, 0  ;;  %v1225_v8 = vsel %vm392_vm2, 1.0, %v1492_v5  ;;  %v1357_v10 = vpack.i.bf16 %v1230_v7, %v1229_v6  ;;  %vm398_vm5 = vcmp.eq.s32.totalorder %v1563_v9, 0  ;;  %v1569_v13 = vld [vmem:[%s302_s25 + $0x10] sm:$0x7f] }
  0x13   : > { %v1226_v11 = vsel %vm393_vm4, 1.0, %v1492_v5  ;;  %vm399_vm6 = vcmp.eq.s32.totalorder %v1566_v12, 0  ;;  %v1231_v15 = vsel %vm398_vm5, 1.0, %v1492_v5  ;;  %v1573_v16 = vld [vmem:[%s302_s25 + $0x18] sm:$0x7f]  ;;  %vm394_vm7 = vcmp.eq.s32.totalorder %v1569_v13, 0 }
  0x14   : > { %v1346_v14 = vpack.i.bf16 %v1226_v11, %v1225_v8  ;;  %1358 = vperm.xlu1 %1356, %v1357_v10   ;;  %v1232_v17 = vsel %vm399_vm6, 1.0, %v1492_v5  ;;  %vm395_vm8 = vcmp.eq.s32.totalorder %v1573_v16, 0  ;;  %v1227_v18 = vsel %vm394_vm7, 1.0, %v1492_v5 }
  0x15   : > { %vm514_vm9 = vcmp.eq.s32.totalorder %v1569_v13, 1  ;;  %v1362_v19 = vpack.i.bf16 %v1232_v17, %v1231_v15  ;;  %v1228_v20 = vsel %vm395_vm8, 1.0, %v1492_v5  ;;  %vm515_vm10 = vcmp.eq.s32.totalorder %v1573_v16, 1 }
  0x16   : > { %1347 = vperm.xlu0 %1345, %v1346_v14   ;;  %v1243_v21 = vsel %vm514_vm9, 1.0, %v1492_v5  ;;  %v1351_v22 = vpack.i.bf16 %v1228_v20, %v1227_v18  ;;  %v1244_v23 = vsel %vm515_vm10, 1.0, %v1492_v5  ;;  %vm513_vm11 = vcmp.eq.s32.totalorder %v1555_v4, 1 }
  0x17   : > { %v1241_v24 = vsel %vm512_vm3, 1.0, %v1492_v5  ;;  %v1242_v25 = vsel %vm513_vm11, 1.0, %v1492_v5  ;;  %vm518_vm12 = vcmp.eq.s32.totalorder %v1563_v9, 1  ;;  %vm519_vm13 = vcmp.eq.s32.totalorder %v1566_v12, 1 }
  0x18   : > { %1363 = vperm.xlu1 %1356, %v1362_v19   ;;  %v1372_v26 = vpack.i.bf16 %v1244_v23, %v1243_v21  ;;  %vm516_vm14 = vcmp.eq.s32.totalorder %v1547_v1, 1  ;;  %v1367_v27 = vpack.i.bf16 %v1242_v25, %v1241_v24  ;;  %v1247_v28 = vsel %vm518_vm12, 1.0, %v1492_v5  ;;  %v1221_v23 = vld [vmem:[%s1797_s3 + $0x4] ss:$0 sm:$0xff]  ;;  %v1222_v24 = vld [vmem:[%s1797_s3 + $0x5] ss:$0 sm:$0xff] }
  0x19   : > { %v1248_v29 = vsel %vm519_vm13, 1.0, %v1492_v5  ;;  %vm517_vm15 = vcmp.eq.s32.totalorder %v1549_v2, 1  ;;  %v1245_v30 = vsel %vm516_vm14, 1.0, %v1492_v5  ;;  %vm634_vm0 = vcmp.eq.s32.totalorder %v1569_v13, 2  ;;  %v335_v25 = vld [vmem:[%s1798_s4] sm:$0x7f] }
  0x1a   : > { %1352 = vperm.xlu0 %1345, %v1351_v22   ;;  %v1246_v31 = vsel %vm517_vm15, 1.0, %v1492_v5  ;;  %vm635_vm1 = vcmp.eq.s32.totalorder %v1573_v16, 2  ;;  %vm632_vm2 = vcmp.eq.s32.totalorder %v1551_v3, 2  ;;  %vm633_vm3 = vcmp.eq.s32.totalorder %v1555_v4, 2 }
  0x1b   : > { %v1382_v32 = vpack.i.bf16 %v1248_v29, %v1247_v28  ;;  %v1377_v33 = vpack.i.bf16 %v1246_v31, %v1245_v30  ;;  %v1259_v34 = vsel %vm634_vm0, 1.0, %v1492_v5  ;;  %v1260_v35 = vsel %vm635_vm1, 1.0, %v1492_v5  ;;  %v1237_v29 = vld [vmem:[%s1667_s28 + $0x20] ss:$0 sm:$0xff]  ;;  %v1238_v30 = vld [vmem:[%s1667_s28 + $0x28] ss:$0 sm:$0xff] }
  0x1c   : > { %1373 = vperm.xlu1 %1356, %v1372_v26   ;;  %v1257_v36 = vsel %vm632_vm2, 1.0, %v1492_v5  ;;  %v1258_v37 = vsel %vm633_vm3, 1.0, %v1492_v5  ;;  %vm638_vm4 = vcmp.eq.s32.totalorder %v1563_v9, 2  ;;  %vm639_vm5 = vcmp.eq.s32.totalorder %v1566_v12, 2  ;;  %v1217_v31 = vld [vmem:[%s1797_s3] ss:$0 sm:$0xff] }
  0x1d   : > { %vm636_vm6 = vcmp.eq.s32.totalorder %v1547_v1, 2  ;;  %vm637_vm7 = vcmp.eq.s32.totalorder %v1549_v2, 2  ;;  %v1392_v38 = vpack.i.bf16 %v1260_v35, %v1259_v34  ;;  %v1387_v39 = vpack.i.bf16 %v1258_v37, %v1257_v36  ;;  %v1218_v34 = vld [vmem:[%s1797_s3 + $0x1] ss:$0 sm:$0xff]  ;;  %v1233_v35 = vld [vmem:[%s1667_s28] ss:$0 sm:$0xff] }
  0x1e   : > { %1368 = vperm.xlu0 %1345, %v1367_v27   ;;  %v1263_v40 = vsel %vm638_vm4, 1.0, %v1492_v5  ;;  %v1264_v41 = vsel %vm639_vm5, 1.0, %v1492_v5  ;;  %v1261_v42 = vsel %vm636_vm6, 1.0, %v1492_v5  ;;  %v1262_v43 = vsel %vm637_vm7, 1.0, %v1492_v5  ;;  %v1234_v36 = vld [vmem:[%s1667_s28 + $0x8] ss:$0 sm:$0xff] }
  0x1f   : > { %vm754_vm8 = vcmp.eq.s32.totalorder %v1569_v13, 3  ;;  %vm755_vm9 = vcmp.eq.s32.totalorder %v1573_v16, 3  ;;  %vm752_vm10 = vcmp.eq.s32.totalorder %v1551_v3, 3  ;;  %vm753_vm11 = vcmp.eq.s32.totalorder %v1555_v4, 3  ;;  %v1223_v37 = vld [vmem:[%s1797_s3 + $0x6] ss:$0 sm:$0xff] }
  0x20   : > { %1383 = vperm.xlu1 %1356, %v1382_v32   ;;  %v1402_v44 = vpack.i.bf16 %v1264_v41, %v1263_v40  ;;  %v1397_v45 = vpack.i.bf16 %v1262_v43, %v1261_v42  ;;  %v1275_v46 = vsel %vm754_vm8, 1.0, %v1492_v5  ;;  %v1276_v47 = vsel %vm755_vm9, 1.0, %v1492_v5 }
  0x21   : > { %v1273_v48 = vsel %vm752_vm10, 1.0, %v1492_v5  ;;  %v1274_v49 = vsel %vm753_vm11, 1.0, %v1492_v5  ;;  %vm758_vm12 = vcmp.eq.s32.totalorder %v1563_v9, 3  ;;  %vm759_vm13 = vcmp.eq.s32.totalorder %v1566_v12, 3 }
  0x22   : > { %1378 = vperm.xlu0 %1345, %v1377_v33   ;;  %vm756_vm14 = vcmp.eq.s32.totalorder %v1547_v1, 3  ;;  %vm757_vm15 = vcmp.eq.s32.totalorder %v1549_v2, 3  ;;  %v1412_v50 = vpack.i.bf16 %v1276_v47, %v1275_v46  ;;  %v1407_v51 = vpack.i.bf16 %v1274_v49, %v1273_v48 }
  0x23   : > { %v1279_v52 = vsel %vm758_vm12, 1.0, %v1492_v5  ;;  %v1280_v53 = vsel %vm759_vm13, 1.0, %v1492_v5  ;;  %v1277_v54 = vsel %vm756_vm14, 1.0, %v1492_v5  ;;  %v1278_v55 = vsel %vm757_vm15, 1.0, %v1492_v5 }
  0x24   : > { %1393 = vperm.xlu1 %1356, %v1392_v38   ;;  %vm874_vm0 = vcmp.eq.s32.totalorder %v1569_v13, 4  ;;  %vm875_vm1 = vcmp.eq.s32.totalorder %v1573_v16, 4  ;;  %vm872_vm2 = vcmp.eq.s32.totalorder %v1551_v3, 4  ;;  %vm873_vm3 = vcmp.eq.s32.totalorder %v1555_v4, 4  ;;  %v1224_v38 = vld [vmem:[%s1797_s3 + $0x7] ss:$0 sm:$0xff] }
  0x25   : > { %v1422_v56 = vpack.i.bf16 %v1280_v53, %v1279_v52  ;;  %v1417_v57 = vpack.i.bf16 %v1278_v55, %v1277_v54  ;;  %v1291_v58 = vsel %vm874_vm0, 1.0, %v1492_v5  ;;  %v1292_v59 = vsel %vm875_vm1, 1.0, %v1492_v5 }
  0x26   : > { %1388 = vperm.xlu0 %1345, %v1387_v39   ;;  %v1289_v60 = vsel %vm872_vm2, 1.0, %v1492_v5  ;;  %v1290_v61 = vsel %vm873_vm3, 1.0, %v1492_v5  ;;  %vm878_vm4 = vcmp.eq.s32.totalorder %v1563_v9, 4  ;;  %vm879_vm5 = vcmp.eq.s32.totalorder %v1566_v12, 4 }
  0x27   : > { %vm876_vm6 = vcmp.eq.s32.totalorder %v1547_v1, 4  ;;  %vm877_vm7 = vcmp.eq.s32.totalorder %v1549_v2, 4  ;;  %v1432_v62 = vpack.i.bf16 %v1292_v59, %v1291_v58  ;;  %v1427_v63 = vpack.i.bf16 %v1290_v61, %v1289_v60  ;;  %v1235_v59 = vld [vmem:[%s1667_s28 + $0x10] ss:$0 sm:$0xff]  ;;  %v1236_v60 = vld [vmem:[%s1667_s28 + $0x18] ss:$0 sm:$0xff] }
  0x28   : > { %1403 = vperm.xlu1 %1356, %v1402_v44   ;;  %v1295_v0 = vsel %vm878_vm4, 1.0, %v1492_v5  ;;  %v1296_v6 = vsel %vm879_vm5, 1.0, %v1492_v5  ;;  %v1293_v7 = vsel %vm876_vm6, 1.0, %v1492_v5  ;;  %v1294_v8 = vsel %vm877_vm7, 1.0, %v1492_v5  ;;  %v1219_v44 = vld [vmem:[%s1797_s3 + $0x2] ss:$0 sm:$0xff] }
  0x29   : > { %vm994_vm8 = vcmp.ge.s32.totalorder %v1569_v13, 5  ;;  %vm995_vm9 = vcmp.ge.s32.totalorder %v1573_v16, 5  ;;  %vm992_vm10 = vcmp.ge.s32.totalorder %v1551_v3, 5  ;;  %vm993_vm11 = vcmp.ge.s32.totalorder %v1555_v4, 5 }
  0x2a   : > { %1398 = vperm.xlu0 %1345, %v1397_v45   ;;  %v1442_v10 = vpack.i.bf16 %v1296_v6, %v1295_v0  ;;  %v1437_v11 = vpack.i.bf16 %v1294_v8, %v1293_v7  ;;  %v1307_v14 = vsel %vm994_vm8, 1.0, %v1492_v5  ;;  %v1308_v15 = vsel %vm995_vm9, 1.0, %v1492_v5  ;;  %v1220_v45 = vld [vmem:[%s1797_s3 + $0x3] ss:$0 sm:$0xff]  ;;  %v1239_v0 = vld [vmem:[%s1667_s28 + $0x30] ss:$0 sm:$0xff] }
  0x2b   : > { %v1305_v17 = vsel %vm992_vm10, 1.0, %v1492_v5  ;;  %v1306_v18 = vsel %vm993_vm11, 1.0, %v1492_v5  ;;  %vm998_vm12 = vcmp.ge.s32.totalorder %v1563_v9, 5  ;;  %vm999_vm13 = vcmp.ge.s32.totalorder %v1566_v12, 5  ;;  %v1240_v6 = vld [vmem:[%s1667_s28 + $0x38] ss:$0 sm:$0xff] }
  0x2c   : > { %1413 = vperm.xlu1 %1356, %v1412_v50   ;;  %vm996_vm14 = vcmp.ge.s32.totalorder %v1547_v1, 5  ;;  %vm997_vm15 = vcmp.ge.s32.totalorder %v1549_v2, 5  ;;  %v1452_v3 = vpack.i.bf16 %v1308_v15, %v1307_v14  ;;  %v1447_v4 = vpack.i.bf16 %v1306_v18, %v1305_v17  ;;  %v1251_v15 = vld [vmem:[%s1667_s28 + $0x11] ss:$0 sm:$0xff]  ;;  %v1252_v17 = vld [vmem:[%s1667_s28 + $0x19] ss:$0 sm:$0xff] }
  0x2d   : > { %v1311_v13 = vsel %vm998_vm12, 1.0, %v1492_v5  ;;  %v1312_v16 = vsel %vm999_vm13, 1.0, %v1492_v5  ;;  %v1309_v19 = vsel %vm996_vm14, 1.0, %v1492_v5  ;;  %v1310_v20 = vsel %vm997_vm15, 1.0, %v1492_v5 }
  0x2e   : > { %1408 = vperm.xlu0 %1345, %v1407_v51   ;;  %v1462_v9 = vpack.i.bf16 %v1312_v16, %v1311_v13  ;;  %v1457_v12 = vpack.i.bf16 %v1310_v20, %v1309_v19  ;;  %v388_v40 = vadd.f32 %v1221_v23, %v335_v25  ;;  %v389_v41 = vadd.f32 %v1222_v24, %v335_v25  ;;  %v1249_v16 = vld [vmem:[%s1667_s28 + $0x1] ss:$0 sm:$0xff]  ;;  %v1250_v19 = vld [vmem:[%s1667_s28 + $0x9] ss:$0 sm:$0xff] }
  0x2f   : > { %v384_v47 = vadd.f32 %v1217_v31, %v335_v25  ;;  %v385_v48 = vadd.f32 %v1218_v34, %v335_v25  ;;  %v390_v51 = vadd.f32 %v1223_v37, %v335_v25  ;;  %v391_v52 = vadd.f32 %v1224_v38, %v335_v25  ;;  %v1268_v34 = vld [vmem:[%s1667_s28 + $0x1a] ss:$0 sm:$0xff] }
  0x30   : > { %1423 = vperm.xlu1 %1356, %v1422_v56   ;;  %v387_v58 = vadd.f32 %v1220_v45, %v335_v25  ;;  %vm1079_vm0 = vcmask 260096  }
  0x32   : > { %1418 = vperm.xlu0 %1345, %v1417_v57   ;;  %v386_v57 = vadd.f32 %v1219_v44, %v335_v25 }
  0x34   : > { %1433 = vperm.xlu1 %1356, %v1432_v62  }
  0x36   : > { %1428 = vperm.xlu0 %1345, %v1427_v63  }
  0x38   : > { %1443 = vperm.xlu1 %1356, %v1442_v10  }
  0x3a   : > { %1438 = vperm.xlu0 %1345, %v1437_v11  }
  0x3c   : > { %1453 = vperm.xlu1 %1356, %v1452_v3  }
  0x3e   : > { %1448 = vperm.xlu0 %1345, %v1447_v4  }
  0x40   : > { %1463 = vperm.xlu1 %1356, %v1462_v9  }
  0x42   : > { %1458 = vperm.xlu0 %1345, %v1457_v12  }
  0x8f   : > { %v1359_v1 = vpop.permute.xlu1 %1358 }
  0x90   : > { %v1361_v26 = vunpack.i.h.bf16 %v1359_v1  ;;  %v1360_v27 = vunpack.i.l.bf16 %v1359_v1 }
  0x91   : > { %v1348_v2 = vpop.permute.xlu0 %1347 }
  0x92   : > { %v1350_v32 = vunpack.i.h.bf16 %v1348_v2  ;;  %v1349_v33 = vunpack.i.l.bf16 %v1348_v2  ;;  %v500_v42 = vmul.f32 %v1360_v27, %v1237_v29  ;;  %v501_v43 = vmul.f32 %v1361_v26, %v1238_v30  ;;  %v1255_v2 = vld [vmem:[%s1667_s28 + $0x31] ss:$0 sm:$0xff]  ;;  %v1253_v26 = vld [vmem:[%s1667_s28 + $0x21] ss:$0 sm:$0xff]  ;;  %v1254_v27 = vld [vmem:[%s1667_s28 + $0x29] ss:$0 sm:$0xff] }
  0x93   : > { %v1661_v21 = vpop.permute.xlu1 %1363 }
  0x94   : > { %v496_v49 = vmul.f32 %v1349_v33, %v1233_v35  ;;  %v497_v50 = vmul.f32 %v1350_v32, %v1234_v36  ;;  %v1366_v55 = vunpack.i.h.bf16 %v1661_v21  ;;  %v1365_v56 = vunpack.i.l.bf16 %v1661_v21  ;;  %v1256_v21 = vld [vmem:[%s1667_s28 + $0x39] ss:$0 sm:$0xff]  ;;  %v1267_v33 = vld [vmem:[%s1667_s28 + $0x12] ss:$0 sm:$0xff] }
  0x95   : > { %v1353_v22 = vpop.permute.xlu0 %1352  ;;  %v1712_v62 = vadd.f32 %v500_v42, %v388_v40  ;;  %v1714_v63 = vadd.f32 %v501_v43, %v389_v41  ;;  %v1265_v41 = vld [vmem:[%s1667_s28 + $0x2] ss:$0 sm:$0xff]  ;;  %v1266_v42 = vld [vmem:[%s1667_s28 + $0xa] ss:$0 sm:$0xff] }
  0x96   : > { %v1355_v53 = vunpack.i.h.bf16 %v1353_v22  ;;  %v1354_v54 = vunpack.i.l.bf16 %v1353_v22  ;;  %v504_v11 = vadd.f32 %v496_v49, %v384_v47  ;;  %v505_v14 = vadd.f32 %v497_v50, %v385_v48 }
  0x97   : > { %v1669_v5 = vpop.permute.xlu1 %1373  ;;  %v502_v12 = vmul.f32 %v1365_v56, %v1239_v0  ;;  %v503_v1 = vmul.f32 %v1366_v55, %v1240_v6  ;;  %v1271_v6 = vld [vmem:[%s1667_s28 + $0x32] ss:$0 sm:$0xff] }
  0x98   : > { %v1376_v7 = vunpack.i.h.bf16 %v1669_v5  ;;  %v1375_v8 = vunpack.i.l.bf16 %v1669_v5  ;;  %v498_v4 = vmul.f32 %v1354_v54, %v1235_v59  ;;  %v499_v13 = vmul.f32 %v1355_v53, %v1236_v60 }
  0x99   : > { %v1680_v28 = vpop.permute.xlu0 %1368  ;;  %v510_v43 = vadd.f32 %v502_v12, %v390_v51  ;;  %v511_v44 = vadd.f32 %v503_v1, %v391_v52 }
  0x9a   : > { %v1371_v18 = vunpack.i.h.bf16 %v1680_v28  ;;  %v1370_v3 = vunpack.i.l.bf16 %v1680_v28  ;;  %v618_v24 = vmul.f32 %v1375_v8, %v1251_v15  ;;  %v619_v25 = vmul.f32 %v1376_v7, %v1252_v17  ;;  %v1272_v7 = vld [vmem:[%s1667_s28 + $0x3a] ss:$0 sm:$0xff]  ;;  %v1269_v17 = vld [vmem:[%s1667_s28 + $0x22] ss:$0 sm:$0xff] }
  0x9b   : > { %v1698_v39 = vpop.permute.xlu1 %1383  ;;  %v506_v37 = vadd.f32 %v498_v4, %v386_v57  ;;  %v507_v38 = vadd.f32 %v499_v13, %v387_v58 }
  0x9c   : > { %v1386_v20 = vunpack.i.h.bf16 %v1698_v39  ;;  %v1385_v9 = vunpack.i.l.bf16 %v1698_v39  ;;  %v616_v31 = vmul.f32 %v1370_v3, %v1249_v16  ;;  %v617_v32 = vmul.f32 %v1371_v18, %v1250_v19  ;;  %v1270_v18 = vld [vmem:[%s1667_s28 + $0x2a] ss:$0 sm:$0xff]  ;;  %v1284_v19 = vld [vmem:[%s1667_s28 + $0x1b] ss:$0 sm:$0xff] }
  0x9d   : > { %v1706_v46 = vpop.permute.xlu0 %1378  ;;  %v626_v48 = vadd.f32 %v618_v24, %v506_v37  ;;  %v627_v49 = vadd.f32 %v619_v25, %v507_v38  ;;  %v1287_v25 = vld [vmem:[%s1667_s28 + $0x33] ss:$0 sm:$0xff] }
  0x9e   : > { %v1381_v22 = vunpack.i.h.bf16 %v1706_v46  ;;  %v1380_v5 = vunpack.i.l.bf16 %v1706_v46  ;;  %v622_v39 = vmul.f32 %v1385_v9, %v1255_v2  ;;  %v623_v40 = vmul.f32 %v1386_v20, %v1256_v21  ;;  %v1281_v2 = vld [vmem:[%s1667_s28 + $0x3] ss:$0 sm:$0xff]  ;;  %v1282_v21 = vld [vmem:[%s1667_s28 + $0xb] ss:$0 sm:$0xff] }
  0x9f   : > { %v1394_v61 = vpop.permute.xlu1 %1393  ;;  %v624_v55 = vadd.f32 %v616_v31, %v504_v11  ;;  %v625_v56 = vadd.f32 %v617_v32, %v505_v14  ;;  %v1285_v32 = vld [vmem:[%s1667_s28 + $0x23] ss:$0 sm:$0xff] }
  0xa0   : > { %v1396_v28 = vunpack.i.h.bf16 %v1394_v61  ;;  %v1395_v29 = vunpack.i.l.bf16 %v1394_v61  ;;  %v620_v45 = vmul.f32 %v1380_v5, %v1253_v26  ;;  %v621_v46 = vmul.f32 %v1381_v22, %v1254_v27  ;;  %v1288_v26 = vld [vmem:[%s1667_s28 + $0x3b] ss:$0 sm:$0xff] }
  0xa1   : > { %v1389_v10 = vpop.permute.xlu0 %1388  ;;  %v630_v59 = vadd.f32 %v622_v39, %v510_v43  ;;  %v631_v60 = vadd.f32 %v623_v40, %v511_v44  ;;  %v1299_v39 = vld [vmem:[%s1667_s28 + $0x14] ss:$0 sm:$0xff]  ;;  %v1300_v40 = vld [vmem:[%s1667_s28 + $0x1c] ss:$0 sm:$0xff] }
  0xa2   : > { %v1391_v35 = vunpack.i.h.bf16 %v1389_v10  ;;  %v1390_v36 = vunpack.i.l.bf16 %v1389_v10  ;;  %v738_v50 = vmul.f32 %v1395_v29, %v1267_v33  ;;  %v739_v53 = vmul.f32 %v1396_v28, %v1268_v34  ;;  %v1286_v33 = vld [vmem:[%s1667_s28 + $0x2b] ss:$0 sm:$0xff] }
  0xa3   : > { %v1404_v23 = vpop.permute.xlu1 %1403  ;;  %v628_v61 = vadd.f32 %v620_v45, %v1712_v62  ;;  %v629_v0 = vadd.f32 %v621_v46, %v1714_v63  ;;  %v1283_v63 = vld [vmem:[%s1667_s28 + $0x13] ss:$0 sm:$0xff] }
  0xa4   : > { %v736_v57 = vmul.f32 %v1390_v36, %v1265_v41  ;;  %v737_v58 = vmul.f32 %v1391_v35, %v1266_v42  ;;  %v1406_v51 = vunpack.i.h.bf16 %v1404_v23  ;;  %v1405_v52 = vunpack.i.l.bf16 %v1404_v23 }
  0xa5   : > { %v1399_v30 = vpop.permute.xlu0 %1398  ;;  %v746_v14 = vadd.f32 %v738_v50, %v626_v48  ;;  %v747_v15 = vadd.f32 %v739_v53, %v627_v49  ;;  %v1298_v48 = vld [vmem:[%s1667_s28 + $0xc] ss:$0 sm:$0xff] }
  0xa6   : > { %v1401_v8 = vunpack.i.h.bf16 %v1399_v30  ;;  %v1400_v10 = vunpack.i.l.bf16 %v1399_v30  ;;  %v744_v62 = vadd.f32 %v736_v57, %v624_v55  ;;  %v745_v16 = vadd.f32 %v737_v58, %v625_v56 }
  0xa7   : > { %v1414_v47 = vpop.permute.xlu1 %1413  ;;  %v742_v12 = vmul.f32 %v1405_v52, %v1271_v6  ;;  %v743_v1 = vmul.f32 %v1406_v51, %v1272_v7 }
  0xa8   : > { %v1416_v3 = vunpack.i.h.bf16 %v1414_v47  ;;  %v1415_v4 = vunpack.i.l.bf16 %v1414_v47  ;;  %v740_v23 = vmul.f32 %v1400_v10, %v1269_v17  ;;  %v741_v24 = vmul.f32 %v1401_v8, %v1270_v18  ;;  %v1297_v47 = vld [vmem:[%s1667_s28 + $0x4] ss:$0 sm:$0xff]  ;;  %v1303_v18 = vld [vmem:[%s1667_s28 + $0x34] ss:$0 sm:$0xff] }
  0xa9   : > { %v1409_v54 = vpop.permute.xlu0 %1408  ;;  %v750_v43 = vadd.f32 %v742_v12, %v630_v59  ;;  %v751_v44 = vadd.f32 %v743_v1, %v631_v60 }
  0xaa   : > { %v1411_v20 = vunpack.i.h.bf16 %v1409_v54  ;;  %v1410_v9 = vunpack.i.l.bf16 %v1409_v54  ;;  %v858_v30 = vmul.f32 %v1415_v4, %v1283_v63  ;;  %v859_v31 = vmul.f32 %v1416_v3, %v1284_v19  ;;  %v1304_v3 = vld [vmem:[%s1667_s28 + $0x3c] ss:$0 sm:$0xff]  ;;  %v1301_v63 = vld [vmem:[%s1667_s28 + $0x24] ss:$0 sm:$0xff]  ;;  %v1302_v19 = vld [vmem:[%s1667_s28 + $0x2c] ss:$0 sm:$0xff] }
  0xab   : > { %v1424_v11 = vpop.permute.xlu1 %1423  ;;  %v748_v49 = vadd.f32 %v740_v23, %v628_v61  ;;  %v749_v50 = vadd.f32 %v741_v24, %v629_v0 }
  0xac   : > { %v1426_v22 = vunpack.i.h.bf16 %v1424_v11  ;;  %v1425_v5 = vunpack.i.l.bf16 %v1424_v11  ;;  %v856_v37 = vmul.f32 %v1410_v9, %v1281_v2  ;;  %v857_v38 = vmul.f32 %v1411_v20, %v1282_v21 }
  0xad   : > { %v1419_v13 = vpop.permute.xlu0 %1418  ;;  %v866_v56 = vadd.f32 %v858_v30, %v746_v14  ;;  %v867_v57 = vadd.f32 %v859_v31, %v747_v15  ;;  %v1313_v15 = vld [vmem:[%s1796_s2] ss:$0 sm:$0xff] }
  0xae   : > { %v1421_v27 = vunpack.i.h.bf16 %v1419_v13  ;;  %v1420_v28 = vunpack.i.l.bf16 %v1419_v13  ;;  %v862_v45 = vmul.f32 %v1425_v5, %v1287_v25  ;;  %v863_v46 = vmul.f32 %v1426_v22, %v1288_v26 }
  0xaf   : > { %v1434_v29 = vpop.permute.xlu1 %1433  ;;  %v864_v6 = vadd.f32 %v856_v37, %v744_v62  ;;  %v865_v59 = vadd.f32 %v857_v38, %v745_v16 }
  0xb0   : > { %v1436_v34 = vunpack.i.h.bf16 %v1434_v29  ;;  %v1435_v35 = vunpack.i.l.bf16 %v1434_v29  ;;  %v860_v53 = vmul.f32 %v1420_v28, %v1285_v32  ;;  %v861_v54 = vmul.f32 %v1421_v27, %v1286_v33 }
  0xb1   : > { %v1429_v36 = vpop.permute.xlu0 %1428  ;;  %v870_v8 = vadd.f32 %v862_v45, %v750_v43  ;;  %v871_v61 = vadd.f32 %v863_v46, %v751_v44 }
  0xb2   : > { %v1431_v41 = vunpack.i.h.bf16 %v1429_v36  ;;  %v1430_v42 = vunpack.i.l.bf16 %v1429_v36  ;;  %v978_v58 = vmul.f32 %v1435_v35, %v1299_v39  ;;  %v979_v51 = vmul.f32 %v1436_v34, %v1300_v40 }
  0xb3   : > { %v1444_v55 = vpop.permute.xlu1 %1443  ;;  %v868_v11 = vadd.f32 %v860_v53, %v748_v49  ;;  %v869_v17 = vadd.f32 %v861_v54, %v749_v50 }
  0xb4   : > { %v976_v60 = vmul.f32 %v1430_v42, %v1297_v47  ;;  %v977_v7 = vmul.f32 %v1431_v41, %v1298_v48  ;;  %v1446_v0 = vunpack.i.h.bf16 %v1444_v55  ;;  %v1445_v10 = vunpack.i.l.bf16 %v1444_v55 }
  0xb5   : > { %v1439_v52 = vpop.permute.xlu0 %1438  ;;  %v986_v62 = vadd.f32 %v978_v58, %v866_v56  ;;  %v987_v16 = vadd.f32 %v979_v51, %v867_v57 }
  0xb6   : > { %v1441_v14 = vunpack.i.h.bf16 %v1439_v52  ;;  %v1440_v4 = vunpack.i.l.bf16 %v1439_v52  ;;  %v984_v1 = vadd.f32 %v976_v60, %v864_v6  ;;  %v985_v2 = vadd.f32 %v977_v7, %v865_v59 }
  0xb7   : > { %v1454_v13 = vpop.permute.xlu1 %1453  ;;  %v982_v5 = vmul.f32 %v1445_v10, %v1303_v18  ;;  %v983_v23 = vmul.f32 %v1446_v0, %v1304_v3 }
  0xb8   : > { %v1456_v20 = vunpack.i.h.bf16 %v1454_v13  ;;  %v1455_v9 = vunpack.i.l.bf16 %v1454_v13  ;;  %v980_v26 = vmul.f32 %v1440_v4, %v1301_v63  ;;  %v981_v27 = vmul.f32 %v1441_v14, %v1302_v19 }
  0xb9   : > { %v1449_v12 = vpop.permute.xlu0 %1448  ;;  %v990_v40 = vadd.f32 %v982_v5, %v870_v8  ;;  %v991_v41 = vadd.f32 %v983_v23, %v871_v61 }
  0xba   : > { %v1451_v21 = vunpack.i.h.bf16 %v1449_v12  ;;  %v1450_v22 = vunpack.i.l.bf16 %v1449_v12  ;;  %v1066_v24 = vmul.f32 %v1456_v20, %v1313_v15  ;;  %v1065_v25 = vmul.f32 %v1455_v9, %v1313_v15 }
  0xbb   : > { %v1464_v30 = vpop.permute.xlu1 %1463  ;;  %v988_v44 = vadd.f32 %v980_v26, %v868_v11  ;;  %v989_v45 = vadd.f32 %v981_v27, %v869_v17 }
  0xbc   : > { %v1064_v28 = vmul.f32 %v1451_v21, %v1313_v15  ;;  %v1063_v29 = vmul.f32 %v1450_v22, %v1313_v15  ;;  %v1073_v31 = vadd.f32 %v1065_v25, %v986_v62  ;;  %v1074_v32 = vadd.f32 %v1066_v24, %v987_v16 }
  0xbd   : > { %v1466_v33 = vunpack.i.h.bf16 %v1464_v30  ;;  %v1465_v34 = vunpack.i.l.bf16 %v1464_v30  ;;  %v1459_v35 = vpop.permute.xlu0 %1458 }
  0xbe   : > { %v1071_v36 = vadd.f32 %v1063_v29, %v984_v1  ;;  %v1072_v37 = vadd.f32 %v1064_v28, %v985_v2  ;;  %v1461_v38 = vunpack.i.h.bf16 %v1459_v35  ;;  %v1460_v39 = vunpack.i.l.bf16 %v1459_v35  ;;  %1082 = vst.msk [vmem:[%s1767_s6 + $0x10] sm:$0x7f] %vm1079_vm0, %v1073_v31  ;;  %1083 = vst.msk [vmem:[%s1767_s6 + $0x18] sm:$0x7f] %vm1079_vm0, %v1074_v32 }
  0xbf   : > { %v1070_v42 = vmul.f32 %v1466_v33, %v1313_v15  ;;  %v1069_v43 = vmul.f32 %v1465_v34, %v1313_v15 }
  0xc0   : > { %1080 = vst.msk [vmem:[%s1767_s6] sm:$0x7f] %vm1079_vm0, %v1071_v36  ;;  %1081 = vst.msk [vmem:[%s1767_s6 + $0x8] sm:$0x7f] %vm1079_vm0, %v1072_v37  ;;  %v1068_v46 = vmul.f32 %v1461_v38, %v1313_v15  ;;  %v1067_v47 = vmul.f32 %v1460_v39, %v1313_v15 }
  0xc1   : > { %v1077_v48 = vadd.f32 %v1069_v43, %v990_v40  ;;  %v1078_v49 = vadd.f32 %v1070_v42, %v991_v41 }
  0xc2   : > { %v1075_v50 = vadd.f32 %v1067_v47, %v988_v44  ;;  %v1076_v53 = vadd.f32 %v1068_v46, %v989_v45 }
  0xc3   : > { %1086 = vst.msk [vmem:[%s1767_s6 + $0x30] sm:$0x7f] %vm1079_vm0, %v1077_v48  ;;  %1087 = vst.msk [vmem:[%s1767_s6 + $0x38] sm:$0x7f] %vm1079_vm0, %v1078_v49 }
  0xc4   : > { %1084 = vst.msk [vmem:[%s1767_s6 + $0x20] sm:$0x7f] %vm1079_vm0, %v1075_v50  ;;  %1085 = vst.msk [vmem:[%s1767_s6 + $0x28] sm:$0x7f] %vm1079_vm0, %v1076_v53 }
  0xc5 PF: > { %s15_s20 = sadd.s32 1, %s1489_s20   ;;  %s1800_s18 = smov %s1485_s19 }
  0xc6   : > { %p12_p5 = scmp.ge.s32.totalorder %s15_s20, 4   ;;  %s1801_s19 = smov %s1803_s21 }
  0xc8   :  { %14 = sbr.rel (!%p12_p5) target bundleno = 2 (0x2), region = 76 }

</bundles_post_ra>
